<compile_context>
chip_gen: v7x
topology: tpu7x:2x2x1
jax: 0.10.0
libtpu: 0.0.40
codegen_flags: <defaults>
</compile_context>

<pallas_src>
import functools

import jax
import jax.numpy as jnp
from jax.experimental import pallas as pl
from jax.experimental.pallas import tpu as pltpu


def _pick_tile(m):
    """Largest tile in {256, 128} that divides m, else the full extent."""
    for t in (256, 128):
        if m % t == 0:
            return t
    return m


def _normalize_kernel(f_ref, out_ref):
    # f_ref: [TR, D] -> out_ref: [TR, D] L2-normalized rows (f32).
    f = f_ref[...].astype(jnp.float32)
    sq = jnp.sum(f * f, axis=1, keepdims=True)
    # F.normalize(dim=1) clamps the norm at 1e-12 -> clamp sq at 1e-24; rsqrt
    # runs on the EUP and the multiply replaces the VPU divide.
    inv = jax.lax.rsqrt(jnp.maximum(sq, 1e-24))
    out_ref[...] = f * inv


def _sim_kernel(a_ref, b_ref, out_ref, *, inv_temperature):
    # a_ref: [TM, D], b_ref: [TN, D], out_ref: [TM, TN].
    # Fold 1/temperature into the (smaller) LHS operand, not the output tile.
    a = a_ref[...] * inv_temperature
    b = b_ref[...]
    # Contract over D of BOTH operands -> no explicit b.T / XLU transpose.
    out_ref[...] = jax.lax.dot_general(
        a, b,
        dimension_numbers=(((1,), (1,)), ((), ())),
        preferred_element_type=jnp.float32,
    )


def contrastive_forward(features, temperature=0.07):
    """Returns (logits [M, M-1], labels [M]) matching the PyTorch module."""
    M, D = features.shape
    assert M % 2 == 0, "batch must be 2N (two augmented views)"
    N = M // 2

    tr = _pick_tile(M)          # row tile for the normalization prologue
    tm = _pick_tile(M)          # output row tile
    tn = _pick_tile(M)          # output col tile (128-multiple keeps vst unmasked)

    # --- Kernel 1: hoisted row normalization (done once, not per output tile) ---
    feats_n = pl.pallas_call(
        _normalize_kernel,
        out_shape=jax.ShapeDtypeStruct((M, D), jnp.float32),
        grid=(M // tr,),
        in_specs=[pl.BlockSpec((tr, D), lambda i: (i, 0))],
        out_specs=pl.BlockSpec((tr, D), lambda i: (i, 0)),
        compiler_params=pltpu.CompilerParams(
            dimension_semantics=("parallel",)),
    )(features)

    # --- Kernel 2: tiled similarity matmul, 1/T folded into the LHS operand ---
    # TODO(synk): for very wide D (>~4K) add a K-reduction grid axis with a
    # VMEM accumulator + pl.when init/finalize instead of full-D row tiles.
    sim = pl.pallas_call(
        functools.partial(_sim_kernel, inv_temperature=1.0 / temperature),
        out_shape=jax.ShapeDtypeStruct((M, M), jnp.float32),
        grid=(M // tm, M // tn),
        in_specs=[
            pl.BlockSpec((tm, D), lambda i, j: (i, 0)),   # row block of fn
            pl.BlockSpec((tn, D), lambda i, j: (j, 0)),   # col block of fn
        ],
        out_specs=pl.BlockSpec((tm, tn), lambda i, j: (i, j)),
        compiler_params=pltpu.CompilerParams(
            dimension_semantics=("parallel", "parallel")),
    )(feats_n, feats_n)

    # --- Glue: single-pass extraction of positives / negatives ---------------
    row = jnp.arange(M)
    pos_col = (row + N) % M                                  # the one positive per row
    positives = sim[row, pos_col][:, None]                   # [M, 1]

    lo = jnp.minimum(row, pos_col)[:, None]                  # excluded cols: {i, (i+N)%M}
    hi = jnp.maximum(row, pos_col)[:, None]
    m = jnp.arange(M - 2)[None, :]
    cols = m + (m >= lo).astype(m.dtype)
    cols = cols + (cols >= hi).astype(cols.dtype)            # skip both excluded columns
    negatives = jnp.take_along_axis(sim, cols, axis=1)       # [M, M-2], one gather pass

    logits = jnp.concatenate([positives, negatives], axis=1)  # [M, M-1]
    labels = jnp.zeros((M,), dtype=jnp.int32)                 # positive is index 0
    return logits, labels


def _reference(features, temperature=0.07):
    # Pure-JAX reference mirroring the PyTorch code path (for sanity check).
    M = features.shape[0]
    N = M // 2
    lab = jnp.concatenate([jnp.arange(N), jnp.arange(N)])
    lab_mat = (lab[None, :] == lab[:, None]).astype(jnp.float32)
    fn = features / jnp.maximum(
        jnp.linalg.norm(features, axis=1, keepdims=True), 1e-12)
    sim = fn @ fn.T
    eye = jnp.eye(M, dtype=bool)
    lab_off = lab_mat[~eye].reshape(M, -1)
    sim_off = sim[~eye].reshape(M, -1)
    pos = sim_off[lab_off.astype(bool)].reshape(M, -1)
    neg = sim_off[~lab_off.astype(bool)].reshape(M, -1)
    logits = jnp.concatenate([pos, neg], axis=1) / temperature
    return logits, jnp.zeros((M,), dtype=jnp.int32)


if __name__ == "__main__":
    key = jax.random.PRNGKey(0)

    # Small shape (single-block path) + a 128-multiple shape (tiled 2x2 grid).
    for (M, D) in [(8, 32), (256, 64)]:
        key, sub = jax.random.split(key)
        features = jax.random.normal(sub, (M, D), dtype=jnp.float32)

        logits, labels = contrastive_forward(features, temperature=0.07)
        logits = jax.block_until_ready(logits)
        labels = jax.block_until_ready(labels)

        ref_logits, ref_labels = _reference(features, temperature=0.07)
        assert logits.shape == (M, M - 1)
        assert labels.shape == (M,)
        assert jnp.allclose(logits, ref_logits, atol=1e-4, rtol=1e-4), (M, D)
        assert jnp.array_equal(labels, ref_labels)

    print("KERNEL_OK")
</pallas_src>

<mosaic_0001>
module attributes {stable_mosaic.version = 11 : i64} {
  func.func @_normalize_kernel(%arg0: i32, %arg1: memref<8x32xf32, #tpu.memory_space<vmem>>, %arg2: memref<8x32xf32, #tpu.memory_space<vmem>>) attributes {dimension_semantics = [#tpu.dimension_semantics<parallel>], iteration_bounds = array<i64: 1>, scalar_prefetch = 0 : i64, scratch_operands = 0 : i64, tpu.core_type = #tpu.core_type<tc>, window_params = [{transform_indices = @transform_0, window_bounds = array<i64: 8, 32>}, {transform_indices = @transform_1, window_bounds = array<i64: 8, 32>}]} {
    %c0 = arith.constant 0 : index
    %c0_0 = arith.constant 0 : index
    %0 = vector.load %arg1[%c0, %c0_0] : memref<8x32xf32, #tpu.memory_space<vmem>>, vector<8x32xf32>
    %1 = arith.mulf %0, %0 : vector<8x32xf32>
    %cst = arith.constant dense<0.000000e+00> : vector<8xf32>
    %2 = vector.multi_reduction <add>, %1, %cst [1] : vector<8x32xf32> to vector<8xf32>
    %3 = vector.shape_cast %2 : vector<8xf32> to vector<8x1xf32>
    %cst_1 = arith.constant 1.000000e-24 : f32
    %4 = vector.broadcast %cst_1 : f32 to vector<8x1xf32>
    %5 = arith.maximumf %3, %4 : vector<8x1xf32>
    %6 = math.rsqrt %5 : vector<8x1xf32>
    %7 = vector.broadcast %6 : vector<8x1xf32> to vector<8x32xf32>
    %8 = arith.mulf %0, %7 : vector<8x32xf32>
    %c0_2 = arith.constant 0 : index
    %c0_3 = arith.constant 0 : index
    %9 = vector.load %arg2[%c0_2, %c0_3] : memref<8x32xf32, #tpu.memory_space<vmem>>, vector<8x32xf32>
    tpu.vector_store %arg2[%c0_2, %c0_3], %8 {strides = array<i32>} : memref<8x32xf32, #tpu.memory_space<vmem>>, vector<8x32xf32>,
    return
  }
  func.func @transform_0(%arg0: i32) -> (i32, i32) {
    %c0_i32 = arith.constant 0 : i32
    %c0_i32_0 = arith.constant 0 : i32
    return %arg0, %c0_i32 : i32, i32
  }
  func.func @transform_1(%arg0: i32) -> (i32, i32) {
    %c0_i32 = arith.constant 0 : i32
    %c0_i32_0 = arith.constant 0 : i32
    return %arg0, %c0_i32 : i32, i32
  }
}

</mosaic_0001>

<bundles_post_ra>
// kernel: tpu_custom_call.1
= control target key start
LH: loop header
LB: loop body
LE: loop exit
PB: predicated region body
PF: predicated region fallthrough
CT: control target
= control target key end

     0   :  { %6 = vsyncpa [#allocation3], 0  ;;  %s134_s0 = inlined_call_operand.hbm [shape: f32[8,32], index: 0, kind: input, shape index: {}]   ;;  %s135_s1 = inlined_call_operand.hbm [shape: f32[8,32], index: 1, kind: output, shape index: {}]  }
   0x1   :  { %7 = vsyncpa [#allocation4], 0  ;;  %s98_s6 = smov [#allocation2]   ;;  %s50_s10 = scalar_lea.hbm %s134_s0, 128 }
   0x2   :  { %s14_s7 = sshll.u32 %s98_s6, 4  ;;  %p51_p0 = scmp.ne.s32.totalorder %s134_s0, %s50_s10  ;;  %s15_s7 = int_to_ptr.vmem [resolvable:$true] %s14_s7 }
   0x3   :  { %p54_p1 = scmp.lt.u32.totalorder %s50_s10, %s134_s0 }
   0x5   :  { %p56_p2 = pnand %p54_p1, %p51_p0 }
   0x7   :  { %59 = shalt.err (!%p56_p2)
}
   0x8   :  { %s60_s15 = scalar_lea.vmem %s15_s7, 128  ;;  %p65_p4 = scmp.lt.s32.totalorder %s15_s7, %s15_s7 }
   0x9   :  { %p61_p3 = scmp.ne.s32.totalorder %s15_s7, %s60_s15  ;;  %p66_p5 = scmp.lt.s32.totalorder %s60_s15, %s60_s15 }
   0xb   :  { %p67_p6 = por %p66_p5, %p65_p4 }
   0xd   :  { %p68_p7 = pnand %p67_p6, %p61_p3 }
   0xf   :  { %71 = shalt.err (!%p68_p7)
}
  0x10   :  { %17 = dma.hbm_to_vmem [thread:$0]  %s134_s0, 128, %s15_s7, [#allocation3]  }
  0x11   :  { %94 = dma.done.wait [#allocation3], 128  }
  0x12   :  { %95 = vsyncadd [#allocation3], 4294967168  ;;  %v21_v0 = vld [vmem:[#allocation2] sm:$0xff]  ;;  %vm23_vm0 = vcmask 261120   ;;  %s99_s18 = smov [#allocation5]  }
  0x13   :  { %v22_v1 = vmul.f32 %v21_v0, %v21_v0  ;;  %s37_s19 = sshll.u32 %s99_s18, 4  ;;  %s38_s19 = int_to_ptr.vmem [resolvable:$true] %s37_s19 }
  0x14   :  { %s72_s20 = scalar_lea.vmem %s38_s19, 128  ;;  %p77_p9 = scmp.lt.s32.totalorder %s38_s19, %s38_s19 }
  0x15   :  { %v24_v2 = vsel %vm23_vm0, %v22_v1, 0.0  ;;  %p73_p8 = scmp.ne.s32.totalorder %s38_s19, %s72_s20  ;;  %p78_p10 = scmp.lt.s32.totalorder %s72_s20, %s72_s20 }
  0x16   :  { %25 = vadd.xlane.f32.xlu0 %v24_v2 }
  0x17   :  { %p79_p11 = por %p78_p10, %p77_p9 }
  0x19   :  { %p80_p12 = pnand %p79_p11, %p73_p8 }
  0xa3   :  { %v26_v3 = vpop.xlane.xlu0 %25 }
  0xa4   :  { %v27_v4 = vmax.f32 %v26_v3, 1e-24 }
  0xa6   :  { %48 = vrsqrt.f32 %v27_v4 }
  0xb0   :  { %v49_v5 = vpop.eup %48 }
  0xb1   :  { %v29_v6 = vmul.f32 %v49_v5, %v21_v0 }
  0xb3   :  { %30 = vst.msk [vmem:[#allocation5] sm:$0xff] %vm23_vm0, %v29_v6 }
  0xb4   :  { %83 = shalt.err (!%p80_p12)
}
  0xb5   :  { %s84_s22 = scalar_lea.hbm %s135_s1, 128 }
  0xb6   :  { %p85_p13 = scmp.ne.s32.totalorder %s135_s1, %s84_s22  ;;  %p88_p0 = scmp.lt.u32.totalorder %s84_s22, %s135_s1 }
  0xb8   :  { %p90_p1 = pnand %p88_p0, %p85_p13 }
  0xba   :  { %93 = shalt.err (!%p90_p1)
}
  0xbb   :  { %40 = dma.vmem_to_hbm [thread:$0]  %s38_s19, 128, %s135_s1, [#allocation4]  }
  0xbc   :  { %96 = dma.done.wait [#allocation4], 128  }
  0xbd   :  { %97 = vsyncadd [#allocation4], 4294967168 }
  0xbe   :  { %44 = vsyncpa [#allocation3], 1 }
  0xbf   :  { %45 = vsyncpa [#allocation4], 1 }

</bundles_post_ra>
